<compile_context>
chip_gen: v7x
topology: tpu7x:2x2x1
jax: 0.10.0
libtpu: 0.0.40
codegen_flags: <defaults>
</compile_context>

<pallas_src>
import functools
import numpy as np
import jax
import jax.numpy as jnp
from jax.experimental import pallas as pl
from jax.experimental.pallas import tpu as pltpu


def _round_up(x, m):
    return (x + m - 1) // m * m


# ----------------------------------------------------------------------------
# Raster-scan rearrange (einops equivalents) -- pure reshape/transpose glue.
#   'b c (h p1) (w p2) -> b (h w) (p1 p2 c)'  then  'b (n g) d -> b n (g d)'
# ----------------------------------------------------------------------------
def raster_rearrange(x, pre_patch_size, group_patch_size):
    B, C, H, W = x.shape
    p = pre_patch_size
    h, w = H // p, W // p
    x = x.reshape(B, C, h, p, w, p)
    x = jnp.transpose(x, (0, 2, 4, 3, 5, 1))          # b h w p1 p2 c
    x = x.reshape(B, h * w, p * p * C)                 # b (h w) (p1 p2 c)
    g = group_patch_size
    return x.reshape(B, (h * w) // g, g * p * p * C)   # b n (g d)


# ----------------------------------------------------------------------------
# Dense interpolation matrix (reference only), matching
# torch.nn.functional.interpolate(mode='linear', align_corners=False).
# ----------------------------------------------------------------------------
def make_interp_matrix(n_out, n_in):
    scale = n_in / n_out
    j = np.arange(n_out, dtype=np.float64)
    src = np.maximum((j + 0.5) * scale - 0.5, 0.0)
    i0 = np.minimum(np.floor(src).astype(np.int64), n_in - 1)
    i1 = np.minimum(i0 + 1, n_in - 1)
    w1 = (src - i0).astype(np.float32)
    w0 = 1.0 - w1
    A = np.zeros((n_out, n_in), dtype=np.float32)
    rows = np.arange(n_out)
    np.add.at(A, (rows, i0), w0)
    np.add.at(A, (rows, i1), w1)
    return A


# ----------------------------------------------------------------------------
# Tile-invariant banded interpolation coefficients for one coarse level.
# Output row j (0 <= j < tt) blends local coarse rows i0, i0+1 with
# i0 = floor((j+0.5)/r - 0.5) in [-1, cw-1].  Taps at local -1 / cw go through
# the 2-row halo (col 0 = previous coarse row, col 1 = next coarse row); the
# halo rows are edge-clamped in the wrapper, which makes both matrices exactly
# identical for every tile (including the global boundary behaviour, since
# clamped taps reduce to w0*x + w1*x = x because w0 + w1 == 1).
# ----------------------------------------------------------------------------
def make_banded_interp(tt, r):
    cw = tt // r
    j = np.arange(tt, dtype=np.float64)
    src = (j + 0.5) / r - 0.5
    i0 = np.floor(src).astype(np.int64)        # in [-1, cw-1]
    i1 = i0 + 1                                 # in [0, cw]
    w1 = (src - i0).astype(np.float32)
    w0 = (1.0 - w1).astype(np.float32)
    a_body = np.zeros((tt, cw), dtype=np.float32)
    a_halo = np.zeros((tt, 2), dtype=np.float32)
    rows = np.arange(tt)
    m0 = i0 >= 0
    np.add.at(a_body, (rows[m0], i0[m0]), w0[m0])
    np.add.at(a_halo, (rows[~m0], 0), w0[~m0])
    m1 = i1 <= cw - 1
    np.add.at(a_body, (rows[m1], i1[m1]), w1[m1])
    np.add.at(a_halo, (rows[~m1], 1), w1[~m1])
    return a_body, a_halo


# ----------------------------------------------------------------------------
# One-time parameter folding (Precision.HIGHEST):
#   W_i' = W_i @ Wf[i*E:(i+1)*E, :],   b' = sum_i b_i @ Wf_i + bf
# Rows of every interpolation operator sum to 1, so b' commutes through the
# interpolation and is added once at the end.  All W_i' are row-padded to a
# multiple of 8 and stacked, with b' appended as the final row; the lane dim
# is zero-padded to a multiple of 128 for unmasked stores.
# ----------------------------------------------------------------------------
def fold_params(params, embed_dim, num_levels):
    hi = jax.lax.Precision.HIGHEST
    Wf, bf = params["fusion"]
    total = embed_dim * num_levels
    n_pad = _round_up(max(total, 128), 128)
    blocks = []
    b_fold = bf.astype(jnp.float32)
    for i in range(num_levels):
        Wi, bi = params["levels"][i]
        Wf_i = Wf[i * embed_dim:(i + 1) * embed_dim, :].astype(jnp.float32)
        Wi_f = jnp.dot(Wi.astype(jnp.float32), Wf_i, precision=hi)
        b_fold = b_fold + jnp.dot(bi.astype(jnp.float32), Wf_i, precision=hi)
        d = Wi.shape[0]
        dp = _round_up(d, 8)
        blocks.append(jnp.pad(Wi_f, ((0, dp - d), (0, n_pad - total))))
    blocks.append(jnp.pad(b_fold, (0, n_pad - total)).reshape(1, n_pad))
    return jnp.concatenate(blocks, axis=0)      # (sum dp + 1, n_pad), float32


# ----------------------------------------------------------------------------
# Fused kernel, one grid step = one (batch, token-tile):
#   acc  = x0 @ W0'
#   acc += A_body_i @ (center_i @ Wi') + A_halo_i @ (halo_i @ Wi')   (i >= 1)
#   out  = acc + b'
# ----------------------------------------------------------------------------
def _make_kernel(num_levels, d_pads):
    L = num_levels
    nc = L - 1
    offs = [0]
    for d in d_pads:
        offs.append(offs[-1] + int(d))

    def kernel(*refs):
        x0_ref = refs[0]
        centers = refs[1:1 + nc]
        halos = refs[1 + nc:1 + 2 * nc]
        a_body = refs[1 + 2 * nc:1 + 3 * nc]
        a_halo = refs[1 + 3 * nc:1 + 4 * nc]
        w_ref = refs[1 + 4 * nc]
        out_ref = refs[2 + 4 * nc]

        w0 = w_ref[offs[0]:offs[1], :]
        acc = jnp.dot(x0_ref[...], w0, preferred_element_type=jnp.float32)
        for i in range(nc):
            wi = w_ref[offs[i + 1]:offs[i + 2], :]
            p = jnp.dot(centers[i][...], wi, preferred_element_type=jnp.float32)
            ph = jnp.dot(halos[i][...], wi, preferred_element_type=jnp.float32)
            acc = acc + jnp.dot(a_body[i][...], p,
                                preferred_element_type=jnp.float32)
            acc = acc + jnp.dot(a_halo[i][...], ph,
                                preferred_element_type=jnp.float32)
        bias = w_ref[offs[L]:offs[L] + 1, :]
        out_ref[...] = (acc + bias).astype(out_ref.dtype)

    return kernel


# ----------------------------------------------------------------------------
# Full forward: single pallas_call (whole jit is one compiled program).
# ----------------------------------------------------------------------------
@functools.partial(jax.jit,
                   static_argnames=("patch_size_list", "embed_dim",
                                    "compute_dtype"))
def hierarchical_forward(x, w_cat, *, patch_size_list, embed_dim,
                         compute_dtype=jnp.float32):
    B = x.shape[0]
    L = len(patch_size_list)
    total = embed_dim * L
    n_pad = w_cat.shape[-1]

    # Raster-scan rearranges (XLA reshape/transpose glue feeding the DMAs).
    xrs = []
    pre = 1
    for g in patch_size_list:
        xrs.append(raster_rearrange(x, pre, g))
        pre *= 2
    n_tokens = xrs[0].shape[1]

    ratios = []
    for i in range(1, L):
        Ni = xrs[i].shape[1]
        assert n_tokens % Ni == 0, "non-integer upsample ratio unsupported"
        ratios.append(n_tokens // Ni)

    # Token tile: multiple of every ratio (and 8), capped at 1024; pad tokens
    # so any token count works (padded outputs are sliced off).
    base = int(np.lcm.reduce([8] + ratios)) if ratios else 8
    cap = max(base, (1024 // base) * base)
    tt = min(cap, _round_up(n_tokens, base))
    n_tok_pad = _round_up(n_tokens, tt)
    num_t = n_tok_pad // tt
    while B * num_t < 2 and tt > base:     # keep >=2 parallel steps (v7x 2-TC)
        tt = max(base, (tt // 2) // base * base)
        n_tok_pad = _round_up(n_tokens, tt)
        num_t = n_tok_pad // tt
    T = B * num_t

    # ---- level 0: fold batch into the token axis, zero-pad features to 8 ----
    d0 = xrs[0].shape[-1]
    d0p = _round_up(d0, 8)
    x0 = jnp.pad(xrs[0], ((0, 0), (0, n_tok_pad - n_tokens), (0, 0)),
                 mode="edge")
    x0 = jnp.pad(x0, ((0, 0), (0, 0), (0, d0p - d0)))
    x0 = x0.reshape(B * n_tok_pad, d0p).astype(compute_dtype)

    # ---- coarse levels: non-overlapping windows + 2-row halos + banded A ----
    d_pads = [d0p]
    centers, halos, a_bodies, a_halos = [], [], [], []
    for i in range(1, L):
        r = ratios[i - 1]
        cw = tt // r
        Ni = xrs[i].shape[1]
        Ni_pad = num_t * cw
        di = xrs[i].shape[-1]
        dip = _round_up(di, 8)
        d_pads.append(dip)
        xi = jnp.pad(xrs[i], ((0, 0), (0, Ni_pad - Ni), (0, 0)), mode="edge")
        xi = jnp.pad(xi, ((0, 0), (0, 0), (0, dip - di)))
        centers.append(xi.reshape(B * num_t, cw, dip).astype(compute_dtype))
        t_idx = np.arange(num_t)
        h_idx = np.stack([np.clip(t_idx * cw - 1, 0, Ni_pad - 1),
                          np.clip(t_idx * cw + cw, 0, Ni_pad - 1)],
                         axis=1).reshape(-1)
        halo = jnp.take(xi, jnp.asarray(h_idx, dtype=jnp.int32), axis=1)
        halos.append(halo.reshape(B * num_t, 2, dip).astype(compute_dtype))
        ab, ah = make_banded_interp(tt, r)
        a_bodies.append(jnp.asarray(ab))
        a_halos.append(jnp.asarray(ah))

    w_cat_c = w_cat.astype(compute_dtype)

    # ---- BlockSpecs ----
    const_mode = pl.Buffered(1)   # constants: fetched once, single-buffered
    in_specs = [pl.BlockSpec((tt, d0p), lambda t: (t, 0))]
    for i in range(1, L):
        cw = tt // ratios[i - 1]
        in_specs.append(pl.BlockSpec((None, cw, d_pads[i]),
                                     lambda t: (t, 0, 0)))
    for i in range(1, L):
        in_specs.append(pl.BlockSpec((None, 2, d_pads[i]),
                                     lambda t: (t, 0, 0)))
    for i in range(1, L):
        cw = tt // ratios[i - 1]
        in_specs.append(pl.BlockSpec((tt, cw), lambda t: (0, 0),
                                     pipeline_mode=const_mode))
    for i in range(1, L):
        in_specs.append(pl.BlockSpec((tt, 2), lambda t: (0, 0),
                                     pipeline_mode=const_mode))
    in_specs.append(pl.BlockSpec(w_cat_c.shape, lambda t: (0, 0),
                                 pipeline_mode=const_mode))
    out_spec = pl.BlockSpec((tt, n_pad), lambda t: (t, 0))

    # ---- cost estimate + explicit VMEM budget (v5e 16MiB / v7x 64MiB safe) --
    itemsize = jnp.dtype(compute_dtype).itemsize
    flops = 2 * tt * d0p * n_pad
    for i in range(1, L):
        cw = tt // ratios[i - 1]
        flops += 2 * (cw + 2) * d_pads[i] * n_pad + 2 * tt * (cw + 2) * n_pad
    flops *= T
    bytes_acc = (x0.size * itemsize
                 + sum(c.size for c in centers) * itemsize
                 + sum(h.size for h in halos) * itemsize
                 + sum(a.size for a in a_bodies) * 4
                 + sum(a.size for a in a_halos) * 4
                 + w_cat_c.size * itemsize
                 + T * tt * n_pad * 4)
    cost = pl.CostEstimate(flops=int(flops), transcendentals=0,
                           bytes_accessed=int(bytes_acc))

    stream_bytes = (tt * d0p * itemsize
                    + sum((tt // ratios[i - 1] + 2) * d_pads[i] * itemsize
                          for i in range(1, L))
                    + tt * n_pad * 4)
    const_bytes = (sum(a.size for a in a_bodies) * 4
                   + sum(a.size for a in a_halos) * 4
                   + w_cat_c.size * itemsize)
    vmem_limit = int(min(max(32 * 2 ** 20, 3 * (2 * stream_bytes + const_bytes)),
                         100 * 2 ** 20))

    out = pl.pallas_call(
        _make_kernel(L, tuple(d_pads)),
        out_shape=jax.ShapeDtypeStruct((B * n_tok_pad, n_pad), jnp.float32),
        grid=(T,),
        in_specs=in_specs,
        out_specs=out_spec,
        compiler_params=pltpu.CompilerParams(
            dimension_semantics=("parallel",),
            vmem_limit_bytes=vmem_limit),
        cost_estimate=cost,
    )(x0, *centers, *halos, *a_bodies, *a_halos, w_cat_c)

    out = out.reshape(B, n_tok_pad, n_pad)
    return out[:, :n_tokens, :total]


# ----------------------------------------------------------------------------
# Pure-JAX reference (mirrors the PyTorch module op-for-op) for validation.
# ----------------------------------------------------------------------------
def reference_forward(x, params, patch_size_list, embed_dim):
    hi = jax.lax.Precision.HIGHEST
    patches = []
    pre = 1
    for i, g in enumerate(patch_size_list):
        W, b = params["levels"][i]
        xr = raster_rearrange(x, pre, g)
        patches.append(jnp.einsum("bnd,de->bne", xr, W, precision=hi) + b)
        pre *= 2
    n_tokens = patches[0].shape[1]
    for i in range(1, len(patches)):
        A = jnp.asarray(make_interp_matrix(n_tokens, patches[i].shape[1]))
        patches[i] = jnp.einsum("tn,bne->bte", A, patches[i], precision=hi)
    xc = jnp.concatenate(patches, axis=-1)
    Wf, bf = params["fusion"]
    return jnp.einsum("bnd,de->bne", xc, Wf, precision=hi) + bf


def init_linear(key, in_dim, out_dim):
    k1, k2 = jax.random.split(key)
    bound = 1.0 / np.sqrt(in_dim)
    W = jax.random.uniform(k1, (in_dim, out_dim), jnp.float32, -bound, bound)
    b = jax.random.uniform(k2, (out_dim,), jnp.float32, -bound, bound)
    return W, b


if __name__ == "__main__":
    img_size = 16
    in_channels = 4
    patch_size_list = (4, 4, 4)   # level i uses pre_patch_size = 2**i
    embed_dim = 32
    B = 2

    key = jax.random.PRNGKey(0)
    keys = jax.random.split(key, 2 + len(patch_size_list))
    x = jax.random.normal(keys[0], (B, in_channels, img_size, img_size),
                          jnp.float32)

    params = {"levels": [], "fusion": None}
    pre = 1
    for i, g in enumerate(patch_size_list):
        in_dim = in_channels * pre * pre * g
        params["levels"].append(init_linear(keys[1 + i], in_dim, embed_dim))
        pre *= 2
    total_dim = embed_dim * len(patch_size_list)
    params["fusion"] = init_linear(keys[-1], total_dim, total_dim)

    # One-time HIGHEST-precision fold of the fusion Linear into level weights.
    w_cat = fold_params(params, embed_dim, len(patch_size_list))

    out = hierarchical_forward(x, w_cat, patch_size_list=patch_size_list,
                               embed_dim=embed_dim,
                               compute_dtype=jnp.float32)
    out = jax.block_until_ready(out)

    n_tokens = (img_size * img_size) // patch_size_list[0]
    assert out.shape == (B, n_tokens, total_dim), out.shape
    assert out.dtype == jnp.float32

    ref = jax.block_until_ready(
        reference_forward(x, params, patch_size_list, embed_dim))
    np.testing.assert_allclose(np.asarray(out), np.asarray(ref),
                               rtol=2e-3, atol=2e-3)

    # Optional bf16 activations/weights with f32 accumulation (v6e/v7x lever).
    out_bf16 = jax.block_until_ready(
        hierarchical_forward(x, w_cat, patch_size_list=patch_size_list,
                             embed_dim=embed_dim,
                             compute_dtype=jnp.bfloat16))
    np.testing.assert_allclose(np.asarray(out_bf16), np.asarray(ref),
                               rtol=1e-1, atol=1e-1)

    print("KERNEL_OK")
</pallas_src>

<mosaic_0001>
module attributes {stable_mosaic.version = 11 : i64} {
  func.func @kernel(%arg0: i32, %arg1: memref<64x16xf32, #tpu.memory_space<vmem>>, %arg2: memref<1x16x64xf32, #tpu.memory_space<vmem>>, %arg3: memref<1x4x256xf32, #tpu.memory_space<vmem>>, %arg4: memref<1x2x64xf32, #tpu.memory_space<vmem>>, %arg5: memref<1x2x256xf32, #tpu.memory_space<vmem>>, %arg6: memref<64x16xf32, #tpu.memory_space<vmem>>, %arg7: memref<64x4xf32, #tpu.memory_space<vmem>>, %arg8: memref<64x2xf32, #tpu.memory_space<vmem>>, %arg9: memref<64x2xf32, #tpu.memory_space<vmem>>, %arg10: memref<337x128xf32, #tpu.memory_space<vmem>>, %arg11: memref<64x128xf32, #tpu.memory_space<vmem>>) attributes {dimension_semantics = [#tpu.dimension_semantics<parallel>], iteration_bounds = array<i64: 2>, scalar_prefetch = 0 : i64, scratch_operands = 0 : i64, tpu.core_type = #tpu.core_type<tc>, window_params = [{transform_indices = @transform_0, window_bounds = array<i64: 64, 16>}, {transform_indices = @transform_1, window_bounds = array<i64: 1, 16, 64>}, {transform_indices = @transform_2, window_bounds = array<i64: 1, 4, 256>}, {transform_indices = @transform_3, window_bounds = array<i64: 1, 2, 64>}, {transform_indices = @transform_4, window_bounds = array<i64: 1, 2, 256>}, {pipeline_mode = #tpu.pipeline_mode<synchronous>, transform_indices = @transform_5, window_bounds = array<i64: 64, 16>}, {pipeline_mode = #tpu.pipeline_mode<synchronous>, transform_indices = @transform_6, window_bounds = array<i64: 64, 4>}, {pipeline_mode = #tpu.pipeline_mode<synchronous>, transform_indices = @transform_7, window_bounds = array<i64: 64, 2>}, {pipeline_mode = #tpu.pipeline_mode<synchronous>, transform_indices = @transform_8, window_bounds = array<i64: 64, 2>}, {pipeline_mode = #tpu.pipeline_mode<synchronous>, transform_indices = @transform_9, window_bounds = array<i64: 337, 128>}, {transform_indices = @transform_10, window_bounds = array<i64: 64, 128>}]} {
    %c0 = arith.constant 0 : index
    %c0_0 = arith.constant 0 : index
    %0 = vector.load %arg10[%c0, %c0_0] : memref<337x128xf32, #tpu.memory_space<vmem>>, vector<16x128xf32>
    %c0_1 = arith.constant 0 : index
    %c0_2 = arith.constant 0 : index
    %1 = vector.load %arg1[%c0_1, %c0_2] : memref<64x16xf32, #tpu.memory_space<vmem>>, vector<64x16xf32>
    %cst = arith.constant dense<0.000000e+00> : vector<64x128xf32>
    %2 = tpu.matmul %1, %0, %cst {dimension_numbers = #tpu.dot_dimension_numbers<[1], [0], [0], [1], [0, 0, 1, 1], [], []>} : vector<64x16xf32>, vector<16x128xf32>, vector<64x128xf32> -> vector<64x128xf32>
    %c16 = arith.constant 16 : index
    %c0_3 = arith.constant 0 : index
    %3 = vector.load %arg10[%c16, %c0_3] : memref<337x128xf32, #tpu.memory_space<vmem>>, vector<64x128xf32>
    %c0_4 = arith.constant 0 : index
    %c0_5 = arith.constant 0 : index
    %c0_6 = arith.constant 0 : index
    %4 = vector.load %arg2[%c0_4, %c0_5, %c0_6] : memref<1x16x64xf32, #tpu.memory_space<vmem>>, vector<1x16x64xf32>
    %5 = vector.shape_cast %4 : vector<1x16x64xf32> to vector<16x64xf32>
    %cst_7 = arith.constant dense<0.000000e+00> : vector<16x128xf32>
    %6 = tpu.matmul %5, %3, %cst_7 {dimension_numbers = #tpu.dot_dimension_numbers<[1], [0], [0], [1], [0, 0, 1, 1], [], []>} : vector<16x64xf32>, vector<64x128xf32>, vector<16x128xf32> -> vector<16x128xf32>
    %c0_8 = arith.constant 0 : index
    %c0_9 = arith.constant 0 : index
    %c0_10 = arith.constant 0 : index
    %7 = vector.load %arg4[%c0_8, %c0_9, %c0_10] : memref<1x2x64xf32, #tpu.memory_space<vmem>>, vector<1x2x64xf32>
    %8 = vector.shape_cast %7 : vector<1x2x64xf32> to vector<2x64xf32>
    %cst_11 = arith.constant dense<0.000000e+00> : vector<2x128xf32>
    %9 = tpu.matmul %8, %3, %cst_11 {dimension_numbers = #tpu.dot_dimension_numbers<[1], [0], [0], [1], [0, 0, 1, 1], [], []>} : vector<2x64xf32>, vector<64x128xf32>, vector<2x128xf32> -> vector<2x128xf32>
    %c0_12 = arith.constant 0 : index
    %c0_13 = arith.constant 0 : index
    %10 = vector.load %arg6[%c0_12, %c0_13] : memref<64x16xf32, #tpu.memory_space<vmem>>, vector<64x16xf32>
    %cst_14 = arith.constant dense<0.000000e+00> : vector<64x128xf32>
    %11 = tpu.matmul %10, %6, %cst_14 {dimension_numbers = #tpu.dot_dimension_numbers<[1], [0], [0], [1], [0, 0, 1, 1], [], []>} : vector<64x16xf32>, vector<16x128xf32>, vector<64x128xf32> -> vector<64x128xf32>
    %12 = arith.addf %2, %11 : vector<64x128xf32>
    %c0_15 = arith.constant 0 : index
    %c0_16 = arith.constant 0 : index
    %13 = vector.load %arg8[%c0_15, %c0_16] : memref<64x2xf32, #tpu.memory_space<vmem>>, vector<64x2xf32>
    %cst_17 = arith.constant dense<0.000000e+00> : vector<64x128xf32>
    %14 = tpu.matmul %13, %9, %cst_17 {dimension_numbers = #tpu.dot_dimension_numbers<[1], [0], [0], [1], [0, 0, 1, 1], [], []>} : vector<64x2xf32>, vector<2x128xf32>, vector<64x128xf32> -> vector<64x128xf32>
    %15 = arith.addf %12, %14 : vector<64x128xf32>
    %c80 = arith.constant 80 : index
    %c0_18 = arith.constant 0 : index
    %16 = vector.load %arg10[%c80, %c0_18] : memref<337x128xf32, #tpu.memory_space<vmem>>, vector<256x128xf32>
    %c0_19 = arith.constant 0 : index
    %c0_20 = arith.constant 0 : index
    %c0_21 = arith.constant 0 : index
    %17 = vector.load %arg3[%c0_19, %c0_20, %c0_21] : memref<1x4x256xf32, #tpu.memory_space<vmem>>, vector<1x4x256xf32>
    %18 = vector.shape_cast %17 : vector<1x4x256xf32> to vector<4x256xf32>
    %cst_22 = arith.constant dense<0.000000e+00> : vector<4x128xf32>
    %19 = tpu.matmul %18, %16, %cst_22 {dimension_numbers = #tpu.dot_dimension_numbers<[1], [0], [0], [1], [0, 0, 1, 1], [], []>} : vector<4x256xf32>, vector<256x128xf32>, vector<4x128xf32> -> vector<4x128xf32>
    %c0_23 = arith.constant 0 : index
    %c0_24 = arith.constant 0 : index
    %c0_25 = arith.constant 0 : index
    %20 = vector.load %arg5[%c0_23, %c0_24, %c0_25] : memref<1x2x256xf32, #tpu.memory_space<vmem>>, vector<1x2x256xf32>
    %21 = vector.shape_cast %20 : vector<1x2x256xf32> to vector<2x256xf32>
    %cst_26 = arith.constant dense<0.000000e+00> : vector<2x128xf32>
    %22 = tpu.matmul %21, %16, %cst_26 {dimension_numbers = #tpu.dot_dimension_numbers<[1], [0], [0], [1], [0, 0, 1, 1], [], []>} : vector<2x256xf32>, vector<256x128xf32>, vector<2x128xf32> -> vector<2x128xf32>
    %c0_27 = arith.constant 0 : index
    %c0_28 = arith.constant 0 : index
    %23 = vector.load %arg7[%c0_27, %c0_28] : memref<64x4xf32, #tpu.memory_space<vmem>>, vector<64x4xf32>
    %cst_29 = arith.constant dense<0.000000e+00> : vector<64x128xf32>
    %24 = tpu.matmul %23, %19, %cst_29 {dimension_numbers = #tpu.dot_dimension_numbers<[1], [0], [0], [1], [0, 0, 1, 1], [], []>} : vector<64x4xf32>, vector<4x128xf32>, vector<64x128xf32> -> vector<64x128xf32>
    %25 = arith.addf %15, %24 : vector<64x128xf32>
    %c0_30 = arith.constant 0 : index
    %c0_31 = arith.constant 0 : index
    %26 = vector.load %arg9[%c0_30, %c0_31] : memref<64x2xf32, #tpu.memory_space<vmem>>, vector<64x2xf32>
    %cst_32 = arith.constant dense<0.000000e+00> : vector<64x128xf32>
    %27 = tpu.matmul %26, %22, %cst_32 {dimension_numbers = #tpu.dot_dimension_numbers<[1], [0], [0], [1], [0, 0, 1, 1], [], []>} : vector<64x2xf32>, vector<2x128xf32>, vector<64x128xf32> -> vector<64x128xf32>
    %28 = arith.addf %25, %27 : vector<64x128xf32>
    %c336 = arith.constant 336 : index
    %c0_33 = arith.constant 0 : index
    %29 = vector.load %arg10[%c336, %c0_33] : memref<337x128xf32, #tpu.memory_space<vmem>>, vector<1x128xf32>
    %30 = vector.broadcast %29 : vector<1x128xf32> to vector<64x128xf32>
    %31 = arith.addf %28, %30 : vector<64x128xf32>
    %c0_34 = arith.constant 0 : index
    %c0_35 = arith.constant 0 : index
    %32 = vector.load %arg11[%c0_34, %c0_35] : memref<64x128xf32, #tpu.memory_space<vmem>>, vector<64x128xf32>
    tpu.vector_store %arg11[%c0_34, %c0_35], %31 {strides = array<i32>} : memref<64x128xf32, #tpu.memory_space<vmem>>, vector<64x128xf32>,
    return
  }
  func.func @transform_0(%arg0: i32) -> (i32, i32) {
    %c0_i32 = arith.constant 0 : i32
    %c0_i32_0 = arith.constant 0 : i32
    return %arg0, %c0_i32 : i32, i32
  }
  func.func @transform_1(%arg0: i32) -> (i32, i32, i32) {
    %c0_i32 = arith.constant 0 : i32
    %c0_i32_0 = arith.constant 0 : i32
    %c0_i32_1 = arith.constant 0 : i32
    return %arg0, %c0_i32, %c0_i32_0 : i32, i32, i32
  }
  func.func @transform_2(%arg0: i32) -> (i32, i32, i32) {
    %c0_i32 = arith.constant 0 : i32
    %c0_i32_0 = arith.constant 0 : i32
    %c0_i32_1 = arith.constant 0 : i32
    return %arg0, %c0_i32, %c0_i32_0 : i32, i32, i32
  }
  func.func @transform_3(%arg0: i32) -> (i32, i32, i32) {
    %c0_i32 = arith.constant 0 : i32
    %c0_i32_0 = arith.constant 0 : i32
    %c0_i32_1 = arith.constant 0 : i32
    return %arg0, %c0_i32, %c0_i32_0 : i32, i32, i32
  }
  func.func @transform_4(%arg0: i32) -> (i32, i32, i32) {
    %c0_i32 = arith.constant 0 : i32
    %c0_i32_0 = arith.constant 0 : i32
    %c0_i32_1 = arith.constant 0 : i32
    return %arg0, %c0_i32, %c0_i32_0 : i32, i32, i32
  }
  func.func @transform_5(%arg0: i32) -> (i32, i32) {
    %c0_i32 = arith.constant 0 : i32
    %c0_i32_0 = arith.constant 0 : i32
    %c0_i32_1 = arith.constant 0 : i32
    return %c0_i32, %c0_i32_0 : i32, i32
  }
  func.func @transform_6(%arg0: i32) -> (i32, i32) {
    %c0_i32 = arith.constant 0 : i32
    %c0_i32_0 = arith.constant 0 : i32
    %c0_i32_1 = arith.constant 0 : i32
    return %c0_i32, %c0_i32_0 : i32, i32
  }
  func.func @transform_7(%arg0: i32) -> (i32, i32) {
    %c0_i32 = arith.constant 0 : i32
    %c0_i32_0 = arith.constant 0 : i32
    %c0_i32_1 = arith.constant 0 : i32
    return %c0_i32, %c0_i32_0 : i32, i32
  }
  func.func @transform_8(%arg0: i32) -> (i32, i32) {
    %c0_i32 = arith.constant 0 : i32
    %c0_i32_0 = arith.constant 0 : i32
    %c0_i32_1 = arith.constant 0 : i32
    return %c0_i32, %c0_i32_0 : i32, i32
  }
  func.func @transform_9(%arg0: i32) -> (i32, i32) {
    %c0_i32 = arith.constant 0 : i32
    %c0_i32_0 = arith.constant 0 : i32
    %c0_i32_1 = arith.constant 0 : i32
    return %c0_i32, %c0_i32_0 : i32, i32
  }
  func.func @transform_10(%arg0: i32) -> (i32, i32) {
    %c0_i32 = arith.constant 0 : i32
    %c0_i32_0 = arith.constant 0 : i32
    return %arg0, %c0_i32 : i32, i32
  }
}

</mosaic_0001>

<bundles_post_ra>
// kernel: hierarchical_forward.1
= control target key start
LH: loop header
LB: loop body
LE: loop exit
PB: predicated region body
PF: predicated region fallthrough
CT: control target
= control target key end

     0   :  { %s2723_s0 = inlined_call_operand.vmem [shape: f32[128,16], index: 0, kind: input, shape index: {}]   ;;  %s2724_s1 = inlined_call_operand.vmem [shape: f32[2,16,64], index: 1, kind: input, shape index: {}]   ;;  %s2725_s2 = inlined_call_operand.vmem [shape: f32[2,4,256], index: 2, kind: input, shape index: {}]   ;;  %s2726_s3 = inlined_call_operand.vmem [shape: f32[2,2,64], index: 3, kind: input, shape index: {}]   ;;  %s2727_s4 = inlined_call_operand.vmem [shape: f32[2,2,256], index: 4, kind: input, shape index: {}]   ;;  %s2728_s5 = inlined_call_operand.vmem [shape: f32[64,16], index: 5, kind: input, shape index: {}]   ;;  %s2729_s6 = inlined_call_operand.vmem [shape: f32[64,4], index: 6, kind: input, shape index: {}]   ;;  %s2730_s7 = inlined_call_operand.vmem [shape: f32[64,2], index: 7, kind: input, shape index: {}]   ;;  %s2731_s8 = inlined_call_operand.vmem [shape: f32[64,2], index: 8, kind: input, shape index: {}]   ;;  %s2732_s9 = inlined_call_operand.vmem [shape: f32[337,128], index: 9, kind: input, shape index: {}]   ;;  %s2733_s10 = inlined_call_operand.hbm [shape: f32[128,128], index: 10, kind: output, shape index: {}]  }
   0x1   :  { %2734 = sst [smem:[#allocation6_spill]] %s2723_s0 }
   0x2   :  { %2735 = sst [smem:[#allocation7_spill]] %s2724_s1 }
   0x3   :  { %2736 = sst [smem:[#allocation8_spill]] %s2726_s3 }
   0x4   :  { %15 = vsyncpa [#allocation3], 0 }
   0x5   :  { %17 = vsyncpa [#allocation3 + $0x1], 0  ;;  %s2283_s13 = smov 0   ;;  %s2285_s14 = smov 0  }
   0x6   :  { %s2287_s15 = smov 0   ;;  %s2289_s16 = smov 0  }
   0x7 LB: > { %s2304_s17 = sadd.s32 4294967295, %s2220_s16   ;;  %s1662_s18 = sadd.s32 4294967294, %s2220_s16   ;;  %s2220_s16 = sphi %s2289_s16, %s2747_s16   ;;  %s2216_s15 = sphi %s2287_s15, %s2746_s15   ;;  %s2212_s14 = sphi %s2285_s14, %s2745_s14   ;;  %s2208_s13 = sphi %s2283_s13, %s2744_s13  }
   0x8   : > { %s2308_s19 = sadd.s32 1, %s2220_s16   ;;  %s265_s20 = sadd.s32 1, %s2216_s15 }
   0x9   : > { %s262_s21 = ssub.s32 %s2220_s16, %s2308_s19  ;;  %p275_p0 = scmp.ne.s32.totalorder %s2216_s15, %s2212_s14 }
   0xa   : > { %p263_p1 = scmp.eq.s32.totalorder %s262_s21, 0  ;;  %p276_p2 = scmp.eq.s32.totalorder %s2304_s17, 1 }
   0xb   : > { %p281_p3 = scmp.ne.s32.totalorder %s2212_s14, %s2208_s13  ;;  %p282_p4 = scmp.eq.s32.totalorder %s1662_s18, 1 }
   0xc   : > { %s2319_s22 = scalar_select %p263_p1, %s2216_s15, %s265_s20  }
   0xd   : > { %p2321_p5 = por %p276_p2, %p275_p0  ;;  %p2325_p6 = por %p282_p4, %p281_p3 }
   0xe   : > { %2737 = sst [smem:[#allocation5_spill]] %s2319_s22  ;;  %p1665_p7 = scmp.ge.s32.totalorder %s2220_s16, 1 }
   0xf   : > { %p355_p8 = scmp.lt.s32.totalorder %s2220_s16, 3 }
  0x11   : > { %p356_p9 = pnand %p1665_p7, %p355_p8 }
  0x12   : > { %v448_v0 = vld [vmem:[%s2732_s9 + $0x10] sm:$0xff] (!%p356_p9)  ;;  %v449_v1 = vld [vmem:[%s2732_s9 + $0x18] sm:$0xff] (!%p356_p9)  ;;  %v450_v2 = vld [vmem:[%s2732_s9 + $0x20] sm:$0xff] (!%p356_p9)  ;;  %p418_p10 = scmp.lt.s32.totalorder (!%p356_p9), %s2304_s17, 1  ;;  %v2222_v5 = vmov (!%p356_p9), 0.0|0.0   ;;  %vm458_vm0 = vcmask (!%p356_p9), 523264  }
  0x13   : > { %359 = sbr.rel (%p356_p9) target bundleno = 781 (0x30d), region = 60  ;;  %v1981_v3 = vpack.c.bf16 (!%p356_p9), %v449_v1, %v448_v0  ;;  %v451_v4 = vld [vmem:[%s2732_s9 + $0x28] sm:$0xff] (!%p356_p9)  ;;  %1997 = vmatprep.subr.bf16.mxu1 (!%p356_p9), %v2222_v5  ;;  %v452_v7 = vld [vmem:[%s2732_s9 + $0x30] sm:$0xff] (!%p356_p9)  ;;  %v453_v8 = vld [vmem:[%s2732_s9 + $0x38] sm:$0xff] (!%p356_p9)  ;;  %s2740_s1 = sld [smem:[#allocation7_spill]] (!%p356_p9)  ;;  %vm2223_vm1 = vmmov (!%p356_p9), 0  }
  0x14   : > { %v1985_v6 = vpack.c.bf16 (!%p356_p9), %v451_v4, %v450_v2  ;;  %v1989_v9 = vpack.c.bf16 (!%p356_p9), %v453_v8, %v452_v7  ;;  %v454_v10 = vld [vmem:[%s2732_s9 + $0x40] sm:$0xff] (!%p356_p9)  ;;  %v455_v11 = vld [vmem:[%s2732_s9 + $0x48] sm:$0xff] (!%p356_p9)  ;;  %s2741_s3 = sld [smem:[#allocation8_spill]] (!%p356_p9)  ;;  %v2224_v15 = vmov (!%p356_p9), 0.0   ;;  %vm622_vm2 = vcmask (!%p356_p9), 130048   ;;  %s2742_s0 = sld [smem:[#allocation6_spill]] (!%p356_p9) }
  0x15   : > { %1982 = vmatprep.subr.bf16.mxu0 (!%p356_p9), %v1981_v3  ;;  %1999 = vmatpush3.bf16.msra.mxu1 (!%p356_p9), %v1981_v3  ;;  %v1993_v13 = vpack.c.bf16 (!%p356_p9), %v455_v11, %v454_v10  ;;  %v614_v17 = vld [vmem:[%s2728_s5] sm:$0xff] (!%p356_p9)  ;;  %v439_v19 = vld [vmem:[%s2732_s9 + $0x8] sm:$0xff] (!%p356_p9)  ;;  %v1047_v23 = vld [vmem:[%s2732_s9 + $0xd0] sm:$0xff] (!%p356_p9)  ;;  %vm914_vm3 = vcmask (!%p356_p9), 1041408   ;;  %vm889_vm4 = vcmask (!%p356_p9), 15360   ;;  %vm1227_vm5 = vcmask (!%p356_p9), 31744  }
  0x16   : > { %1984 = vmatpush3.bf16.msra.mxu0 (!%p356_p9), %v1981_v3  ;;  %2000 = vmatprep.subr.bf16.mxu1 (!%p356_p9), %v2222_v5  ;;  %v438_v18 = vld [vmem:[%s2732_s9] sm:$0xff] (!%p356_p9)  ;;  %v1048_v24 = vld [vmem:[%s2732_s9 + $0xd8] sm:$0xff] (!%p356_p9)  ;;  %v1031_v29 = vld [vmem:[%s2732_s9 + $0x50] sm:$0xff] (!%p356_p9)  ;;  %vm1252_vm6 = vcmask (!%p356_p9), 1043456   ;;  %s409_s18 = sand.u32 (!%p356_p9), 1, %s2212_s14   ;;  %s1732_s11 = sshll.u32 (!%p356_p9), %s2304_s17, 10 }
  0x17   : > { %1986 = vmatprep.subr.bf16.mxu0 (!%p356_p9), %v1985_v6  ;;  %1904 = vmatprep.mubr.msk.f32.mxu1 (!%p356_p9), %vm2223_vm1, %v2224_v15  ;;  %v2013_v20 = vpack.c.bf16 (!%p356_p9), %v439_v19, %v438_v18  ;;  %v2396_v28 = vpack.c.bf16 (!%p356_p9), %v1048_v24, %v1047_v23  ;;  %v1032_v30 = vld [vmem:[%s2732_s9 + $0x58] sm:$0xff] (!%p356_p9)  ;;  %v1049_v31 = vld [vmem:[%s2732_s9 + $0xe0] sm:$0xff] (!%p356_p9)  ;;  %v1050_v32 = vld [vmem:[%s2732_s9 + $0xe8] sm:$0xff] (!%p356_p9) }
  0x18   : > { %v615_v33 = vld [vmem:[%s2728_s5 + $0x8] sm:$0xff] (!%p356_p9)  ;;  %v2413_v34 = vpack.c.bf16 (!%p356_p9), %v1032_v30, %v1031_v29  ;;  %v2416_v35 = vpack.c.bf16 (!%p356_p9), %v1050_v32, %v1049_v31  ;;  %v1033_v36 = vld [vmem:[%s2732_s9 + $0x60] sm:$0xff] (!%p356_p9)  ;;  %v616_v38 = vld [vmem:[%s2728_s5 + $0x10] sm:$0xff] (!%p356_p9) }
  0x19   : > { %2002 = vmatpush3.bf16.msra.mxu1 (!%p356_p9), %v1985_v6  ;;  %v1034_v37 = vld [vmem:[%s2732_s9 + $0x68] sm:$0xff] (!%p356_p9)  ;;  %v1051_v39 = vld [vmem:[%s2732_s9 + $0xf0] sm:$0xff] (!%p356_p9)  ;;  %v1052_v40 = vld [vmem:[%s2732_s9 + $0xf8] sm:$0xff] (!%p356_p9) }
  0x1a   : > { %s2351_s26 = scalar_select %p418_p10, %s2304_s17, 1  ;;  %1988 = vmatpush3.bf16.msra.mxu0 %v1985_v6  ;;  %2003 = vmatprep.subr.bf16.mxu1 %v2222_v5  ;;  %v2436_v41 = vpack.c.bf16 %v1034_v37, %v1033_v36  ;;  %v617_v42 = vld [vmem:[%s2728_s5 + $0x18] sm:$0xff]  ;;  %v2443_v43 = vpack.c.bf16 %v1052_v40, %v1051_v39  ;;  %v1035_v44 = vld [vmem:[%s2732_s9 + $0x70] sm:$0xff]  ;;  %v618_v46 = vld [vmem:[%s2728_s5 + $0x20] sm:$0xff] }
  0x1b   : > { %1990 = vmatprep.subr.bf16.mxu0 %v1989_v9  ;;  %v1036_v45 = vld [vmem:[%s2732_s9 + $0x78] sm:$0xff]  ;;  %v1053_v47 = vld [vmem:[%s2732_s9 + $0x100] sm:$0xff]  ;;  %v1054_v48 = vld [vmem:[%s2732_s9 + $0x108] sm:$0xff] }
  0x1c   : > { %s1729_s27 = sshll.u32 %s2351_s26, 4  ;;  %s1673_s21 = sshll.u32 %s2351_s26, 1  ;;  %v2027_v49 = vpack.c.bf16 %v1036_v45, %v1035_v44  ;;  %v1037_v50 = vld [vmem:[%s2732_s9 + $0x80] sm:$0xff]  ;;  %v619_v51 = vld [vmem:[%s2728_s5 + $0x28] sm:$0xff]  ;;  %v2029_v52 = vpack.c.bf16 %v1054_v48, %v1053_v47  ;;  %v620_v54 = vld [vmem:[%s2728_s5 + $0x30] sm:$0xff] }
  0x1d   : > { %s422_s30 = scalar_lea.vmem %s2740_s1, %s1729_s27  ;;  %2005 = vmatpush3.bf16.msra.mxu1 %v1989_v9  ;;  %s431_s28 = scalar_lea.vmem %s2741_s3, %s1673_s21  ;;  %v1038_v53 = vld [vmem:[%s2732_s9 + $0x88] sm:$0xff]  ;;  %v1055_v56 = vld [vmem:[%s2732_s9 + $0x110] sm:$0xff]  ;;  %v1056_v57 = vld [vmem:[%s2732_s9 + $0x118] sm:$0xff] }
  0x1e   : > { %v456_v12 = vld [vmem:[%s422_s30] sm:$0xff]  ;;  %1992 = vmatpush3.bf16.msra.mxu0 %v1989_v9  ;;  %2006 = vmatprep.subr.bf16.mxu1 %v2222_v5  ;;  %v457_v14 = vld [vmem:[%s422_s30 + $0x8] sm:$0xff]  ;;  %s1667_s21 = sshll.u32 %s2304_s17, 3  ;;  %s1730_s20 = sshll.u32 %s2351_s26, 3  ;;  %v2031_v58 = vpack.c.bf16 %v1038_v53, %v1037_v50  ;;  %v621_v59 = vld [vmem:[%s2728_s5 + $0x38] sm:$0xff]  ;;  %v2033_v61 = vpack.c.bf16 %v1056_v57, %v1055_v56 }
  0x1f   : > { %1885 = vmatprep.mubr.msk.f32.mxu0 %vm458_vm0, %v456_v12  ;;  %1994 = vmatprep.subr.bf16.mxu0 %v1993_v13  ;;  %v540_v16 = vld [vmem:[%s431_s28] sm:$0x3]  ;;  %p413_p11 = scmp.lt.s32.totalorder %s1667_s21, 15  ;;  %s427_s27 = scalar_lea.vmem %s2725_s2, %s1730_s20  ;;  %v1039_v62 = vld [vmem:[%s2732_s9 + $0x90] sm:$0xff]  ;;  %v1040_v63 = vld [vmem:[%s2732_s9 + $0x98] sm:$0xff] }
  0x20   : > { %v1063_v55 = vld [vmem:[%s427_s27] sm:$0xff]  ;;  %v1058_v1 = vld [vmem:[%s2732_s9 + $0x128] sm:$0xff]  ;;  %v2035_v2 = vpack.c.bf16 %v1040_v63, %v1039_v62  ;;  %v1059_v6 = vld [vmem:[%s2732_s9 + $0x130] sm:$0xff]  ;;  %s1731_s28 = sshll.u32 %s2351_s26, 2  ;;  %s2676_s3 = scalar_lea.hbm %s2733_s10, %s1732_s11 }
  0x21   : > { %2008 = vmatpush3.bf16.msra.mxu1 %v1993_v13  ;;  %s2749_s21 = smov (!%p413_p11, %s1667_s21), 15  ;;  %v1065_v60 = vcombine.high %v1063_v55, %v1063_v55  ;;  %v1057_v0 = vld [vmem:[%s2732_s9 + $0x120] sm:$0xff]  ;;  %v1042_v5 = vld [vmem:[%s2732_s9 + $0xa8] sm:$0xff]  ;;  %v1060_v7 = vld [vmem:[%s2732_s9 + $0x138] sm:$0xff]  ;;  %s436_s20 = scalar_lea.vmem %s2727_s4, %s1731_s28 }
  0x22   : > { %1996 = vmatpush3.bf16.msra.mxu0 %v1993_v13  ;;  %s1668_s25 = sshll.u32 %s2749_s21, 3  ;;  %v2037_v3 = vpack.c.bf16 %v1058_v1, %v1057_v0  ;;  %v1041_v4 = vld [vmem:[%s2732_s9 + $0xa0] sm:$0xff]  ;;  %v2041_v9 = vpack.c.bf16 %v1060_v7, %v1059_v6  ;;  %v1043_v10 = vld [vmem:[%s2732_s9 + $0xb0] sm:$0xff]  ;;  %v1044_v11 = vld [vmem:[%s2732_s9 + $0xb8] sm:$0xff]  ;;  %s1666_s21 = sshll.u32 %s409_s18, 6 }
  0x23   : > { %2014 = vmatprep.subr.bf16.mxu0 %v2013_v20  ;;  %s2384_s29 = scalar_lea.vmem %s2742_s0, %s1668_s25  ;;  %v2039_v8 = vpack.c.bf16 %v1042_v5, %v1041_v4  ;;  %v1061_v12 = vld [vmem:[%s2732_s9 + $0x140] sm:$0xff]  ;;  %v1062_v13 = vld [vmem:[%s2732_s9 + $0x148] sm:$0xff]  ;;  %v883_v31 = vld [vmem:[%s2730_s7 + $0x10] sm:$0xff]  ;;  %s411_s28 = scalar_lea.vmem [#allocation2], %s1666_s21 }
  0x24   : > { %1905 = vmatmul.mubr.msk.f32.vlgmr.msra.gmra.mrb[0].mxu1 %vm458_vm0, %v540_v16  ;;  %v440_v21 = vld [vmem:[%s2384_s29] sm:$0xff]  ;;  %v441_v22 = vld [vmem:[%s2384_s29 + $0x8] sm:$0xff]  ;;  %v2045_v15 = vpack.c.bf16 %v1062_v13, %v1061_v12  ;;  %v442_v23 = vld [vmem:[%s2384_s29 + $0x10] sm:$0xff]  ;;  %s1552_s27 = sshll.u32 %s411_s28, 4  ;;  %s2682_s17 = scalar_lea.sflag [#allocation3], %s409_s18  ;;  %s2678_s27 = int_to_ptr.vmem [resolvable:$true] %s1552_s27 }
  0x25   : > { %1886 = vmatmul.mubr.msk.f32.vlgmr.msra.gmra.mrb[0].mxu0 %vm458_vm0, %v457_v14  ;;  %1911 = vmatprep.mubr.msk.f32.mxu1 %vm622_vm2, %v614_v17  ;;  %v2043_v14 = vpack.c.bf16 %v1044_v11, %v1043_v10  ;;  %v1045_v16 = vld [vmem:[%s2732_s9 + $0xc0] sm:$0xff]  ;;  %v1046_v17 = vld [vmem:[%s2732_s9 + $0xc8] sm:$0xff]  ;;  %v443_v24 = vld [vmem:[%s2384_s29 + $0x18] sm:$0xff]  ;;  %s2158_s22 = scalar_lea.vmem %s2678_s27, 1024 }
  0x26   : > { %2016 = vmatpush3.bf16.msra.mxu0 %v2013_v20  ;;  %1927 = vmatprep.mubr.msk.f32.mxu0 %vm622_vm2, %v440_v21  ;;  %v2047_v18 = vpack.c.bf16 %v1046_v17, %v1045_v16  ;;  %v1704_v19 = vld.sshfl [vmem:[%s436_s20] sm:$0x33 pattern:$0x76325410]  ;;  %v882_v30 = vld [vmem:[%s2730_s7 + $0x8] sm:$0xff]  ;;  %v884_v32 = vld [vmem:[%s2730_s7 + $0x18] sm:$0xff]  ;;  %p2159_p12 = scmp.ne.s32.totalorder %s2678_s27, %s2158_s22 }
  0x27   : > { %v1146_v20 = vcombine.high %v1704_v19, %v1704_v19  ;;  %v881_v29 = vld [vmem:[%s2730_s7] sm:$0xff]  ;;  %v888_v36 = vld [vmem:[%s2730_s7 + $0x38] sm:$0xff]  ;;  %v1221_v50 = vld [vmem:[%s2729_s6 + $0x10] sm:$0xff]  ;;  %s2225_s20 = smov [#allocation2]  }
  0x28   : > { %v1219_v37 = vld [vmem:[%s2729_s6] sm:$0xff]  ;;  %v1224_v53 = vld [vmem:[%s2729_s6 + $0x28] sm:$0xff]  ;;  %v1372_v62 = vld [vmem:[%s2731_s8 + $0x18] sm:$0xff]  ;;  %p2160_p13 = pnand %p2159_p12, %p2321_p5  ;;  %s2162_s26 = sshll.u32 %s2225_s20, 4  ;;  %s2163_s26 = int_to_ptr.vmem [resolvable:$false] %s2162_s26 }
  0x29   : > { %1928 = vmatmul.mubr.msk.f32.vlgmr.msra.gmra.mrb[2].mxu0 %vm622_vm2, %v441_v22  ;;  %v1369_v56 = vld [vmem:[%s2731_s8] sm:$0xff]  ;;  %v1374_v0 = vld [vmem:[%s2731_s8 + $0x28] sm:$0xff]  ;;  %v1375_v1 = vld [vmem:[%s2731_s8 + $0x30] sm:$0xff]  ;;  %s2164_s30 = scalar_lea.vmem %s2163_s26, 2048  ;;  %p2165_p1 = scmp.lt.s32.totalorder %s2678_s27, %s2163_s26 }
  0x2a   : > { %1930 = vmatprep.mubr.msk.f32.mxu0 %vm622_vm2, %v442_v23  ;;  %v1373_v63 = vld [vmem:[%s2731_s8 + $0x20] sm:$0xff]  ;;  %v1723_v4 = vld [vmem:[%s2732_s9 + $0x150] ss:$0 sm:$0xff]  ;;  %p2161_p0 = pneg %p2160_p13  ;;  %p2166_p2 = scmp.lt.s32.totalorder %s2164_s30, %s2158_s22 }
  0x2c   : > { %p2167_p3 = por %p2166_p2, %p2165_p1 }
  0x2d   : > { %1931 = vmatmul.mubr.msk.f32.gmra.mrb[4].mxu0 %vm622_vm2, %v443_v24 }
  0x2e   : > { %p2168_p4 = pnand %p2167_p3, %p2161_p0 }
  0xf7   : > { %v610_v21 = vpop.f32.mrb[0].mxu1 }
  0xf8   : > { %v1887_v25 = vpop.f32.mrb[0].mxu0  ;;  %v1906_v22 = vpop.f32.mrb[1].mxu1  ;;  %1939 = vmatprep.subr.msk.mxu0 %vm914_vm3, %v610_v21 }
  0xf9   : > { %v531_v26 = vpop.f32.mrb[1].mxu0  ;;  %1940 = vmatpush3.msk.msra.mxu0 %vm914_vm3, %v610_v21 }
  0xfa   : > { %v2009_v27 = vpack.c.bf16 %v1887_v25, %v531_v26  ;;  %v444_v25 = vld [vmem:[%s2384_s29 + $0x20] sm:$0xff]  ;;  %v445_v26 = vld [vmem:[%s2384_s29 + $0x28] sm:$0xff] }
  0xfb   : > { %1933 = vmatprep.mubr.msk.f32.mxu0 %vm622_vm2, %v444_v25 }
  0xfc   : > { %2010 = vmatprep.subr.bf16.mxu1 %v2009_v27  ;;  %1934 = vmatmul.mubr.msk.f32.gmra.mrb[6].mxu0 %vm622_vm2, %v445_v26 }
  0xfd   : > { %2012 = vmatpush3.bf16.msra.mxu1 %v2009_v27  ;;  %v446_v27 = vld [vmem:[%s2384_s29 + $0x30] sm:$0xff] }
  0xfe   : > { %2018 = vmatprep.subr.bf16.mxu1 %v2396_v28  ;;  %1936 = vmatprep.mubr.msk.f32.mxu0 %vm622_vm2, %v446_v27 }
 0x100   : > { %1912 = vmatmul.mubr.msk.f32.vlgmr.msra.gmra.mrb[2].mxu1 %vm622_vm2, %v615_v33  ;;  %v885_v33 = vld [vmem:[%s2730_s7 + $0x20] sm:$0xff] }
 0x101   : > { %2020 = vmatpush3.bf16.msra.mxu1 %v2413_v34  ;;  %1914 = vmatprep.mubr.msk.f32.mxu1 %vm622_vm2, %v616_v38 }
 0x102   : > { %2022 = vmatprep.subr.bf16.mxu1 %v2416_v35 }
 0x104   : > { %1915 = vmatmul.mubr.msk.f32.gmra.mrb[4].mxu1 %vm622_vm2, %v617_v42 }
 0x105   : > { %2024 = vmatpush3.bf16.msra.mxu1 %v2436_v41  ;;  %1917 = vmatprep.mubr.msk.f32.mxu1 %vm622_vm2, %v618_v46 }
 0x106   : > { %2026 = vmatprep.subr.bf16.mxu1 %v2443_v43 }
 0x108   : > { %1918 = vmatmul.mubr.msk.f32.gmra.mrb[6].mxu1 %vm622_vm2, %v619_v51  ;;  %v1222_v51 = vld [vmem:[%s2729_s6 + $0x18] sm:$0xff] }
 0x109   : > { %2028 = vmatpush3.bf16.msra.mxu1 %v2027_v49  ;;  %1920 = vmatprep.mubr.msk.f32.mxu1 %vm622_vm2, %v620_v54  ;;  %v1225_v54 = vld [vmem:[%s2729_s6 + $0x30] sm:$0xff] }
 0x10a   : > { %2030 = vmatprep.subr.bf16.mxu1 %v2029_v52 }
 0x10c   : > { %1921 = vmatmul.mubr.msk.f32.gmra.mrb[8].mxu1 %vm622_vm2, %v621_v59 }
 0x10d   : > { %2032 = vmatpush3.bf16.msra.mxu1 %v2031_v58  ;;  %1131 = vmatprep.mubr.f32.mxu1 %v1065_v60  ;;  %v1370_v60 = vld [vmem:[%s2731_s8 + $0x8] sm:$0xff] }
 0x10e   : > { %2034 = vmatprep.subr.bf16.mxu1 %v2033_v61 }
 0x111   : > { %2036 = vmatpush3.bf16.msra.mxu1 %v2035_v2 }
 0x112   : > { %2038 = vmatprep.subr.bf16.mxu1 %v2037_v3 }
 0x115   : > { %2040 = vmatpush3.bf16.msra.mxu1 %v2039_v8 }
 0x116   : > { %2042 = vmatprep.subr.bf16.mxu1 %v2041_v9 }
 0x119   : > { %2044 = vmatpush3.bf16.msra.mxu1 %v2043_v14 }
 0x11a   : > { %2046 = vmatprep.subr.bf16.mxu1 %v2045_v15 }
 0x11d   : > { %2048 = vmatpush3.bf16.msra.mxu1 %v2047_v18 }
 0x11e   : > { %2050 = vmatprep.subr.bf16.mxu1 %v2396_v28  ;;  %v447_v28 = vld [vmem:[%s2384_s29 + $0x38] sm:$0xff] }
 0x11f   : > { %1937 = vmatmul.mubr.msk.f32.gmra.mrb[8].mxu0 %vm622_vm2, %v447_v28 }
 0x120   : > { %1132 = vmatmul.mubr.f32.vlgmr.msra.gmra.mrb[10].mxu1 %v1063_v55  ;;  %1941 = vmatprep.mubr.msk.f32.mxu0 %vm889_vm4, %v881_v29  ;;  %v1226_v55 = vld [vmem:[%s2729_s6 + $0x38] sm:$0xff] }
 0x121   : > { %2052 = vmatpush3.bf16.msra.mxu1 %v2413_v34  ;;  %1213 = vmatprep.mubr.f32.mxu1 %v1146_v20  ;;  %v886_v34 = vld [vmem:[%s2730_s7 + $0x28] sm:$0xff] }
 0x122   : > { %2054 = vmatprep.subr.bf16.mxu1 %v2416_v35  ;;  %v887_v35 = vld [vmem:[%s2730_s7 + $0x30] sm:$0xff] }
 0x123   : > { %1942 = vmatmul.mubr.msk.f32.vlgmr.msra.gmra.mrb[2].mxu0 %vm889_vm4, %v882_v30 }
 0x124   : > { %1944 = vmatprep.mubr.msk.f32.mxu0 %vm889_vm4, %v883_v31 }
 0x125   : > { %2056 = vmatpush3.bf16.msra.mxu1 %v2436_v41 }
 0x126   : > { %2058 = vmatprep.subr.bf16.mxu1 %v2443_v43 }
 0x127   : > { %1945 = vmatmul.mubr.msk.f32.gmra.mrb[4].mxu0 %vm889_vm4, %v884_v32 }
 0x128   : > { %1947 = vmatprep.mubr.msk.f32.mxu0 %vm889_vm4, %v885_v33 }
 0x129   : > { %2060 = vmatpush3.bf16.msra.mxu1 %v2027_v49  ;;  %v1220_v49 = vld [vmem:[%s2729_s6 + $0x8] sm:$0xff] }
 0x12a   : > { %2062 = vmatprep.subr.bf16.mxu1 %v2029_v52  ;;  %v1223_v52 = vld [vmem:[%s2729_s6 + $0x20] sm:$0xff] }
 0x12b   : > { %1948 = vmatmul.mubr.msk.f32.gmra.mrb[6].mxu0 %vm889_vm4, %v886_v34 }
 0x12c   : > { %1950 = vmatprep.mubr.msk.f32.mxu0 %vm889_vm4, %v887_v35 }
 0x12d   : > { %2064 = vmatpush3.bf16.msra.mxu1 %v2031_v58 }
 0x12e   : > { %2066 = vmatprep.subr.bf16.mxu1 %v2033_v61  ;;  %v1371_v61 = vld [vmem:[%s2731_s8 + $0x10] sm:$0xff] }
 0x12f   : > { %1951 = vmatmul.mubr.msk.f32.gmra.mrb[8].mxu0 %vm889_vm4, %v888_v36 }
 0x130   : > { %1955 = vmatprep.mubr.msk.f32.mxu0 %vm1227_vm5, %v1219_v37 }
 0x131   : > { %2068 = vmatpush3.bf16.msra.mxu1 %v2035_v2  ;;  %v1376_v2 = vld [vmem:[%s2731_s8 + $0x38] sm:$0xff] }
 0x132   : > { %2070 = vmatprep.subr.bf16.mxu1 %v2037_v3 }
 0x135   : > { %2072 = vmatpush3.bf16.msra.mxu1 %v2039_v8 }
 0x136   : > { %2074 = vmatprep.subr.bf16.mxu1 %v2041_v9 }
 0x139   : > { %2076 = vmatpush3.bf16.msra.mxu1 %v2043_v14 }
 0x13a   : > { %2078 = vmatprep.subr.bf16.mxu1 %v2045_v15 }
 0x13d   : > { %2080 = vmatpush3.bf16.msra.mxu1 %v2047_v18 }
 0x140   : > { %1214 = vmatmul.mubr.f32.vlgmr.msra.gmra.mrb[12].mxu1 %v1704_v19 }
 0x1d3   : > { %v1913_v38 = vpop.f32.mrb[2].mxu1 }
 0x1d4   : > { %v713_v39 = vpop.f32.mrb[3].mxu1 }
 0x1d7   : > { %v1916_v40 = vpop.f32.mrb[4].mxu1 }
 0x1d8   : > { %v723_v41 = vpop.f32.mrb[5].mxu1 }
 0x1db   : > { %v2592_v42 = vpop.f32.mrb[6].mxu1 }
 0x1dc   : > { %v2594_v43 = vpop.f32.mrb[7].mxu1 }
 0x1df   : > { %v2596_v44 = vpop.f32.mrb[8].mxu1 }
 0x1e0   : > { %v2598_v45 = vpop.f32.mrb[9].mxu1 }
 0x1f3   : > { %v1813_v46 = vpop.f32.mrb[10].mxu1 }
 0x1f4   : > { %v1814_v47 = vpop.f32.mrb[11].mxu1 }
 0x1f5   : > { %v1815_v48 = vadd.f32 %v1814_v47, %v1813_v46 }
 0x1f7   : > { %1953 = vmatprep.subr.msk.mxu0 %vm1252_vm6, %v1815_v48 }
 0x1f8   : > { %1954 = vmatpush3.msk.msra.mxu0 %vm1252_vm6, %v1815_v48 }
 0x1f9   : > { %1956 = vmatmul.mubr.msk.f32.vlgmr.msra.gmra.mrb[2].mxu0 %vm1227_vm5, %v1220_v49 }
 0x1fa   : > { %1958 = vmatprep.mubr.msk.f32.mxu0 %vm1227_vm5, %v1221_v50 }
 0x1fd   : > { %1959 = vmatmul.mubr.msk.f32.gmra.mrb[4].mxu0 %vm1227_vm5, %v1222_v51 }
 0x1fe   : > { %1961 = vmatprep.mubr.msk.f32.mxu0 %vm1227_vm5, %v1223_v52 }
 0x201   : > { %1962 = vmatmul.mubr.msk.f32.gmra.mrb[6].mxu0 %vm1227_vm5, %v1224_v53 }
 0x202   : > { %1964 = vmatprep.mubr.msk.f32.mxu0 %vm1227_vm5, %v1225_v54 }
 0x205   : > { %1965 = vmatmul.mubr.msk.f32.gmra.mrb[8].mxu0 %vm1227_vm5, %v1226_v55 }
 0x206   : > { %1969 = vmatprep.mubr.msk.f32.mxu0 %vm889_vm4, %v1369_v56 }
 0x213   : > { %v1848_v57 = vpop.f32.mrb[12].mxu1 }
 0x214   : > { %v1849_v58 = vpop.f32.mrb[13].mxu1 }
 0x215   : > { %v1850_v59 = vadd.f32 %v1849_v58, %v1848_v57 }
 0x217   : > { %1967 = vmatprep.subr.msk.mxu0 %vm914_vm3, %v1850_v59 }
 0x218   : > { %1968 = vmatpush3.msk.msra.mxu0 %vm914_vm3, %v1850_v59 }
 0x219   : > { %1970 = vmatmul.mubr.msk.f32.vlgmr.msra.gmra.mrb[2].mxu0 %vm889_vm4, %v1370_v60 }
 0x21a   : > { %1972 = vmatprep.mubr.msk.f32.mxu0 %vm889_vm4, %v1371_v61 }
 0x21d   : > { %1973 = vmatmul.mubr.msk.f32.gmra.mrb[4].mxu0 %vm889_vm4, %v1372_v62 }
 0x21e   : > { %1975 = vmatprep.mubr.msk.f32.mxu0 %vm889_vm4, %v1373_v63 }
 0x221   : > { %1976 = vmatmul.mubr.msk.f32.gmra.mrb[6].mxu0 %vm889_vm4, %v1374_v0 }
 0x222   : > { %1978 = vmatprep.mubr.msk.f32.mxu0 %vm889_vm4, %v1375_v1 }
 0x225   : > { %1979 = vmatmul.mubr.msk.f32.gmra.mrb[8].mxu0 %vm889_vm4, %v1376_v2 }
 0x2ec   : > { %v1971_v3 = vpop.f32.mrb[2].mxu0 }
 0x2ed   : > { %v2081_v5 = vadd.f32 %v1971_v3, %v1913_v38  ;;  %v1470_v6 = vpop.f32.mrb[3].mxu0 }
 0x2ee   : > { %v2082_v7 = vadd.f32 %v1470_v6, %v713_v39 }
 0x2ef   : > { %v1523_v8 = vadd.f32 %v2081_v5, %v1723_v4 }
 0x2f0   : > { %v1522_v9 = vadd.f32 %v2082_v7, %v1723_v4  ;;  %v1974_v10 = vpop.f32.mrb[4].mxu0 }
 0x2f1   : > { %1531 = vst [vmem:[%s411_s28 + $0x8] sm:$0xff] %v1523_v8  ;;  %v2083_v11 = vadd.f32 %v1974_v10, %v1916_v40  ;;  %v1480_v12 = vpop.f32.mrb[5].mxu0 }
 0x2f2   : > { %1530 = vst [vmem:[%s411_s28] sm:$0xff] %v1522_v9  ;;  %v2084_v13 = vadd.f32 %v1480_v12, %v723_v41 }
 0x2f3   : > { %v1525_v14 = vadd.f32 %v2083_v11, %v1723_v4 }
 0x2f4   : > { %v1524_v15 = vadd.f32 %v2084_v13, %v1723_v4  ;;  %v1977_v16 = vpop.f32.mrb[6].mxu0 }
 0x2f5   : > { %1533 = vst [vmem:[%s411_s28 + $0x18] sm:$0xff] %v1525_v14  ;;  %v2085_v17 = vadd.f32 %v1977_v16, %v2592_v42  ;;  %v1490_v18 = vpop.f32.mrb[7].mxu0 }
 0x2f6   : > { %1532 = vst [vmem:[%s411_s28 + $0x10] sm:$0xff] %v1524_v15  ;;  %v2086_v19 = vadd.f32 %v1490_v18, %v2594_v43 }
 0x2f7   : > { %v1527_v20 = vadd.f32 %v2085_v17, %v1723_v4 }
 0x2f8   : > { %v1526_v21 = vadd.f32 %v2086_v19, %v1723_v4  ;;  %v1980_v22 = vpop.f32.mrb[8].mxu0 }
 0x2f9   : > { %1535 = vst [vmem:[%s411_s28 + $0x28] sm:$0xff] %v1527_v20  ;;  %v2087_v23 = vadd.f32 %v1980_v22, %v2596_v44  ;;  %v1500_v24 = vpop.f32.mrb[9].mxu0 }
 0x2fa   : > { %1534 = vst [vmem:[%s411_s28 + $0x20] sm:$0xff] %v1526_v21  ;;  %v2088_v25 = vadd.f32 %v1500_v24, %v2598_v45 }
 0x2fb   : > { %v1529_v26 = vadd.f32 %v2087_v23, %v1723_v4 }
 0x2fc   : > { %v1528_v27 = vadd.f32 %v2088_v25, %v1723_v4 }
 0x2fd   : > { %1537 = vst [vmem:[%s411_s28 + $0x38] sm:$0xff] %v1529_v26 }
 0x2fe   : > { %1536 = vst [vmem:[%s411_s28 + $0x30] sm:$0xff] %v1528_v27 }
 0x2ff   : > { %2171 = shalt.err (!%p2168_p4)
}
 0x300   : > { %s2172_s12 = scalar_lea.hbm %s2676_s3, 1024  ;;  %s2176_s25 = scalar_lea.hbm %s2733_s10, 2048 }
 0x301   : > { %p2173_p7 = scmp.ne.s32.totalorder %s2676_s3, %s2172_s12  ;;  %p2177_p10 = scmp.lt.u32.totalorder %s2676_s3, %s2733_s10 }
 0x302   : > { %p2178_p11 = scmp.lt.u32.totalorder %s2176_s25, %s2172_s12  ;;  %p2180_p13 = scmp.lt.u32.totalorder %s2172_s12, %s2676_s3 }
 0x303   : > { %p2174_p8 = pnand %p2173_p7, %p2321_p5 }
 0x304   : > { %p2179_p12 = por %p2178_p11, %p2177_p10 }
 0x305   : > { %p2175_p9 = pneg %p2174_p8 }
 0x306   : > { %p2181_p0 = por %p2180_p13, %p2179_p12 }
 0x308   : > { %p2182_p1 = pnand %p2181_p0, %p2175_p9 }
 0x30a   : > { %2185 = shalt.err (!%p2182_p1)
}
 0x30b   : > { %s2226_s11 = smov 128   ;;  %s2227_s1 = smov 8  }
 0x30c   : > { %2113 = dma.vmem_to_hbm [thread:$0]  (%p2321_p5), %s2678_s27, 1024, %s2676_s3, %s2682_s17, %s2226_s11, %s2226_s11, %s2227_s1  }
 0x30d PF: > { %p2119_p2 = scmp.ge.s32.totalorder %s2220_s16, 2  ;;  %s1567_s0 = sand.u32 1, %s2208_s13  }
 0x30e   : > { %s1568_s22 = scalar_lea.sflag [#allocation3], %s1567_s0 }
 0x30f   : > { %p2116_p3 = pnand %p2119_p2, %p2325_p6 }
 0x311   : > { %2203 = dma.done.wait (!%p2116_p3), %s1568_s22, 1024  }
 0x312   : > { %2205 = vsyncadd (!%p2116_p3), %s1568_s22, 4294966272  ;;  %s2743_s20 = sld [smem:[#allocation5_spill]]  ;;  %p20_p4 = scmp.ge.s32.totalorder %s2308_s19, 4  }
 0x313   : > { %s2744_s13 = smov %s2212_s14  ;;  %s2745_s14 = smov %s2216_s15 }
 0x314   : > { %s2747_s16 = smov %s2308_s19  ;;  %22 = sbr.rel (!%p20_p4) target bundleno = 7 (0x7), region = 107 }
 0x318   : > { %s2746_s15 = smov %s2743_s20 }
 0x31b   :  { %1573 = vsyncpa [#allocation3], 1 }
 0x31c   :  { %1575 = vsyncpa [#allocation3 + $0x1], 1 }

</bundles_post_ra>
